<compile_context>
chip_gen: v7x
topology: tpu7x:2x2x1
jax: 0.10.0
libtpu: 0.0.40
codegen_flags: <defaults>
</compile_context>

<pallas_src>
import jax
import jax.numpy as jnp
from jax.experimental import pallas as pl
from jax.experimental.pallas import tpu as pltpu

_LANE = 128
_SUBLANE = 8
_BLOCK_BUDGET_BYTES = 8 << 20          # ~8 MiB per block (f32: 2048 rows @ w=1024)
_VMEM_LIMIT_BYTES = 48 << 20           # 2 bufs x (in+out) x 8 MiB = 32 MiB < 48 MiB
_LANE_CANDIDATES = (1024, 512, 256, 128)


def _mish_kernel(x_ref, o_ref):
    # TODO(synk): on v6e/v7x a bf16 input could be computed natively in bf16;
    # f32 compute is kept for uniform accuracy across generations (v5e has no
    # bf16 VPU/EUP) and the kernel is HBM-bound anyway.
    x = x_ref[...].astype(jnp.float32)

    # mish(x) = x * tanh(softplus(x)).  With t = exp(x):
    #   tanh(log1p(t)) = ((1+t)^2 - 1) / ((1+t)^2 + 1) = d / (d + 2),  d = t*(t+2)
    t = jnp.exp(jnp.minimum(x, 20.0))          # single EUP transcendental
    d = t * (t + 2.0)                          # VALU
    denom = d + 2.0                            # >= 2, never zero/negative
    r = pl.reciprocal(denom, approx=True)      # EUP vrcp (approx), cheap slot
    r = r * (2.0 - denom * r)                  # one Newton step, VALU-only
    y = x * d * r
    y = jnp.where(x > 20.0, x, y)              # softplus(x)~x, tanh->1 => y == x

    o_ref[...] = y.astype(o_ref.dtype)


def _round_up(a, b):
    return (a + b - 1) // b * b


def _pick_block_rows(rows, w, itemsize):
    """Dtype-aware byte-budget block sizing, >=2 grid steps when possible."""
    budget_rows = max(
        _SUBLANE,
        (_BLOCK_BUDGET_BYTES // (w * itemsize)) // _SUBLANE * _SUBLANE,
    )
    # v7x has 2 TensorCores: with dimension_semantics=("parallel",) the grid
    # only helps if it can be split, so cap the block at ~half the rows
    # (rounded up to a sublane multiple).  No downside on 1-TC v5e/v6e.
    half = _round_up(pl.cdiv(rows, 2), _SUBLANE)
    # Result is either a multiple of 8 (< rows) or equals the full row extent.
    return min(budget_rows, half, rows)


def _run_2d(x2d):
    rows, w = x2d.shape
    block_rows = _pick_block_rows(rows, w, x2d.dtype.itemsize)
    grid = (pl.cdiv(rows, block_rows),)
    return pl.pallas_call(
        _mish_kernel,
        out_shape=jax.ShapeDtypeStruct((rows, w), x2d.dtype),
        grid_spec=pltpu.PrefetchScalarGridSpec(
            num_scalar_prefetch=0,
            grid=grid,
            in_specs=[pl.BlockSpec((block_rows, w), lambda i: (i, 0))],
            out_specs=pl.BlockSpec((block_rows, w), lambda i: (i, 0)),
        ),
        compiler_params=pltpu.CompilerParams(
            dimension_semantics=("parallel",),
            vmem_limit_bytes=_VMEM_LIMIT_BYTES,
        ),
    )(x2d)


def mish(x: jax.Array) -> jax.Array:
    """Elementwise mish via a Pallas TPU kernel. Works on any shape / f-dtype."""
    orig_shape = x.shape
    n = x.size
    if n == 0:
        return x

    # Fast path 1: the natural 2D collapse is already lane-dense -> zero-copy
    # (no flatten-induced relayout, no padding).
    if x.ndim >= 2 and orig_shape[-1] % _LANE == 0:
        w = orig_shape[-1]
        rows = n // w
        out2d = _run_2d(x.reshape(rows, w))
        return out2d.reshape(orig_shape)

    flat = x.reshape(-1)

    # Fast path 2: widest lane-dense slab that divides n exactly (no jnp.pad
    # copy, no tail slice).
    for w in _LANE_CANDIDATES:
        if n % w == 0:
            rows = n // w
            out2d = _run_2d(flat.reshape(rows, w))
            return out2d.reshape(orig_shape)

    # Fallback for truly ragged sizes: pad by at most 127 elements up to the
    # next 128-lane multiple (padded tail computes mish(0)=0 and is sliced off).
    w = _LANE
    n_pad = _round_up(n, w)
    flat = jnp.pad(flat, (0, n_pad - n))
    rows = n_pad // w
    out2d = _run_2d(flat.reshape(rows, w))
    return out2d.reshape(-1)[:n].reshape(orig_shape)


def _mish_ref(x):
    # Pure-JAX reference for verification.
    return x * jnp.tanh(jax.nn.softplus(x))


if __name__ == "__main__":
    key = jax.random.PRNGKey(0)

    # NCHW input, as the PyTorch module would see (Mish has no parameters).
    # n = 2048 -> exact 1024-lane slab, no padding.
    x = jax.random.normal(key, (2, 4, 16, 16), dtype=jnp.float32) * 3.0
    y = mish(x)
    jax.block_until_ready(y)
    y_ref = _mish_ref(x)
    assert y.shape == x.shape and y.dtype == x.dtype
    # approx-reciprocal + Newton step: agrees with f32 reference to ~1e-6 rel.
    assert jnp.allclose(y, y_ref, atol=1e-4, rtol=1e-4), "mismatch vs reference"

    # Lane-dense last dim -> natural-collapse zero-copy path, >=2 grid steps.
    x1 = jax.random.normal(jax.random.PRNGKey(1), (2, 8, 256), dtype=jnp.float32) * 4.0
    y1 = mish(x1)
    jax.block_until_ready(y1)
    assert y1.shape == x1.shape and y1.dtype == x1.dtype
    assert jnp.allclose(y1, _mish_ref(x1), atol=1e-4, rtol=1e-4), "collapse-path mismatch"

    # Edge-value / ragged-shape check (x>20 fast path, underflow, padded tail).
    x2 = jnp.linspace(-30.0, 30.0, 4 * 257, dtype=jnp.float32).reshape(4, 257)
    y2 = mish(x2)
    jax.block_until_ready(y2)
    y2_ref = _mish_ref(x2)
    assert y2.shape == x2.shape and y2.dtype == x2.dtype
    assert jnp.allclose(y2, y2_ref, atol=1e-4, rtol=1e-4), "edge-case mismatch"

    print("KERNEL_OK")
</pallas_src>

<mosaic_0001>
module attributes {stable_mosaic.version = 11 : i64} {
  func.func @_mish_kernel(%arg0: i32, %arg1: memref<2x1024xf32, #tpu.memory_space<vmem>>, %arg2: memref<2x1024xf32, #tpu.memory_space<vmem>>) attributes {dimension_semantics = [#tpu.dimension_semantics<parallel>], iteration_bounds = array<i64: 1>, scalar_prefetch = 0 : i64, scratch_operands = 0 : i64, tpu.core_type = #tpu.core_type<tc>, window_params = [{transform_indices = @transform_0, window_bounds = array<i64: 2, 1024>}, {transform_indices = @transform_1, window_bounds = array<i64: 2, 1024>}]} {
    %c0 = arith.constant 0 : index
    %c0_0 = arith.constant 0 : index
    %0 = vector.load %arg1[%c0, %c0_0] : memref<2x1024xf32, #tpu.memory_space<vmem>>, vector<2x1024xf32>
    %cst = arith.constant 2.000000e+01 : f32
    %1 = vector.broadcast %cst : f32 to vector<2x1024xf32>
    %2 = arith.minimumf %0, %1 : vector<2x1024xf32>
    %3 = math.exp %2 : vector<2x1024xf32>
    %cst_1 = arith.constant 2.000000e+00 : f32
    %4 = vector.broadcast %cst_1 : f32 to vector<2x1024xf32>
    %5 = arith.addf %3, %4 : vector<2x1024xf32>
    %6 = arith.mulf %3, %5 : vector<2x1024xf32>
    %cst_2 = arith.constant 2.000000e+00 : f32
    %7 = vector.broadcast %cst_2 : f32 to vector<2x1024xf32>
    %8 = arith.addf %6, %7 : vector<2x1024xf32>
    %9 = tpu.reciprocal %8 {approx = true} : vector<2x1024xf32> -> vector<2x1024xf32>
    %10 = arith.mulf %8, %9 : vector<2x1024xf32>
    %cst_3 = arith.constant 2.000000e+00 : f32
    %11 = vector.broadcast %cst_3 : f32 to vector<2x1024xf32>
    %12 = arith.subf %11, %10 : vector<2x1024xf32>
    %13 = arith.mulf %9, %12 : vector<2x1024xf32>
    %14 = arith.mulf %0, %6 : vector<2x1024xf32>
    %15 = arith.mulf %14, %13 : vector<2x1024xf32>
    %cst_4 = arith.constant 2.000000e+01 : f32
    %16 = vector.broadcast %cst_4 : f32 to vector<2x1024xf32>
    %17 = arith.cmpf ogt, %0, %16 : vector<2x1024xf32>
    %18 = arith.select %17, %0, %15 : vector<2x1024xi1>, vector<2x1024xf32>
    %c0_5 = arith.constant 0 : index
    %c0_6 = arith.constant 0 : index
    %19 = vector.load %arg2[%c0_5, %c0_6] : memref<2x1024xf32, #tpu.memory_space<vmem>>, vector<2x1024xf32>
    tpu.vector_store %arg2[%c0_5, %c0_6], %18 {strides = array<i32>} : memref<2x1024xf32, #tpu.memory_space<vmem>>, vector<2x1024xf32>,
    return
  }
  func.func @transform_0(%arg0: i32) -> (i32, i32) {
    %c0_i32 = arith.constant 0 : i32
    %c0_i32_0 = arith.constant 0 : i32
    return %arg0, %c0_i32 : i32, i32
  }
  func.func @transform_1(%arg0: i32) -> (i32, i32) {
    %c0_i32 = arith.constant 0 : i32
    %c0_i32_0 = arith.constant 0 : i32
    return %arg0, %c0_i32 : i32, i32
  }
}

</mosaic_0001>

<bundles_post_ra>
// kernel: tpu_custom_call.1
= control target key start
LH: loop header
LB: loop body
LE: loop exit
PB: predicated region body
PF: predicated region fallthrough
CT: control target
= control target key end

     0   :  { %6 = vsyncpa [#allocation3], 0  ;;  %s162_s0 = inlined_call_operand.hbm [shape: f32[2,1024], index: 0, kind: input, shape index: {}]   ;;  %s163_s1 = inlined_call_operand.hbm [shape: f32[2,1024], index: 1, kind: output, shape index: {}]  }
   0x1   :  { %7 = vsyncpa [#allocation4], 0  ;;  %s126_s6 = smov [#allocation2]   ;;  %s78_s10 = scalar_lea.hbm %s162_s0, 256 }
   0x2   :  { %s14_s7 = sshll.u32 %s126_s6, 4  ;;  %p79_p0 = scmp.ne.s32.totalorder %s162_s0, %s78_s10  ;;  %s15_s7 = int_to_ptr.vmem [resolvable:$true] %s14_s7 }
   0x3   :  { %p82_p1 = scmp.lt.u32.totalorder %s78_s10, %s162_s0 }
   0x5   :  { %p84_p2 = pnand %p82_p1, %p79_p0 }
   0x7   :  { %87 = shalt.err (!%p84_p2)
}
   0x8   :  { %s88_s15 = scalar_lea.vmem %s15_s7, 256  ;;  %p93_p4 = scmp.lt.s32.totalorder %s15_s7, %s15_s7 }
   0x9   :  { %p89_p3 = scmp.ne.s32.totalorder %s15_s7, %s88_s15  ;;  %p94_p5 = scmp.lt.s32.totalorder %s88_s15, %s88_s15 }
   0xb   :  { %p95_p6 = por %p94_p5, %p93_p4 }
   0xd   :  { %p96_p7 = pnand %p95_p6, %p89_p3 }
   0xf   :  { %99 = shalt.err (!%p96_p7)
}
  0x10   :  { %17 = dma.hbm_to_vmem [thread:$0]  %s162_s0, 256, %s15_s7, [#allocation3]  }
  0x11   :  { %122 = dma.done.wait [#allocation3], 256  }
  0x12   :  { %123 = vsyncadd [#allocation3], 4294967040  ;;  %v21_v0 = vld [vmem:[#allocation2] sm:$0xff]  ;;  %v22_v1 = vld [vmem:[#allocation2 + $0x8] sm:$0xff]  ;;  %s127_s0 = smov [#allocation5]  }
  0x13   :  { %v23_v2 = vmin.f32 %v21_v0, 20.0  ;;  %v24_v3 = vmin.f32 %v22_v1, 20.0  ;;  %vm47_vm0 = vcmp.gt.f32.partialorder %v21_v0, 20.0  ;;  %s59_s18 = sshll.u32 %s127_s0, 4  ;;  %vm48_vm1 = vcmp.gt.f32.partialorder %v22_v1, 20.0  ;;  %s60_s18 = int_to_ptr.vmem [resolvable:$true] %s59_s18 }
  0x14   :  { %s100_s19 = scalar_lea.vmem %s60_s18, 256  ;;  %p105_p9 = scmp.lt.s32.totalorder %s60_s18, %s60_s18 }
  0x15   :  { %v25_v4 = vmul.f32 1.442695, %v23_v2  ;;  %v27_v5 = vmul.f32 1.442695, %v24_v3  ;;  %p101_p8 = scmp.ne.s32.totalorder %s60_s18, %s100_s19  ;;  %p106_p10 = scmp.lt.s32.totalorder %s100_s19, %s100_s19 }
  0x17   :  { %70 = vpow2.f32 %v25_v4  ;;  %p107_p11 = por %p106_p10, %p105_p9 }
  0x18   :  { %72 = vpow2.f32 %v27_v5 }
  0x19   :  { %p108_p12 = pnand %p107_p11, %p101_p8 }
  0x21   :  { %v71_v6 = vpop.eup %70 }
  0x22   :  { %v73_v7 = vpop.eup %72  ;;  %v29_v8 = vadd.f32 2.0, %v71_v6 }
  0x23   :  { %v30_v9 = vadd.f32 2.0, %v73_v7 }
  0x24   :  { %v31_v10 = vmul.f32 %v71_v6, %v29_v8 }
  0x25   :  { %v32_v11 = vmul.f32 %v73_v7, %v30_v9 }
  0x26   :  { %v33_v12 = vadd.f32 2.0, %v31_v10  ;;  %v43_v19 = vmul.f32 %v31_v10, %v21_v0 }
  0x27   :  { %v34_v13 = vadd.f32 2.0, %v32_v11  ;;  %v44_v21 = vmul.f32 %v32_v11, %v22_v1 }
  0x28   :  { %74 = vrcp.f32 %v33_v12 }
  0x29   :  { %76 = vrcp.f32 %v34_v13 }
  0x32   :  { %v75_v14 = vpop.eup %74 }
  0x33   :  { %v77_v15 = vpop.eup %76  ;;  %v37_v16 = vmul.f32 %v75_v14, %v33_v12 }
  0x34   :  { %v38_v17 = vmul.f32 %v77_v15, %v34_v13 }
  0x35   :  { %v39_v18 = vsub.f32 2.0, %v37_v16 }
  0x36   :  { %v40_v20 = vsub.f32 2.0, %v38_v17 }
  0x37   :  { %v41_v22 = vmul.f32 %v75_v14, %v39_v18 }
  0x38   :  { %v42_v23 = vmul.f32 %v77_v15, %v40_v20 }
  0x39   :  { %v45_v24 = vmul.f32 %v43_v19, %v41_v22 }
  0x3a   :  { %v46_v25 = vmul.f32 %v44_v21, %v42_v23 }
  0x3b   :  { %v49_v26 = vsel %vm47_vm0, %v21_v0, %v45_v24 }
  0x3c   :  { %51 = vst [vmem:[#allocation5] sm:$0xff] %v49_v26  ;;  %v50_v27 = vsel %vm48_vm1, %v22_v1, %v46_v25 }
  0x3d   :  { %52 = vst [vmem:[#allocation5 + $0x8] sm:$0xff] %v50_v27 }
  0x3e   :  { %111 = shalt.err (!%p108_p12)
}
  0x3f   :  { %s112_s22 = scalar_lea.hbm %s163_s1, 256 }
  0x40   :  { %p113_p13 = scmp.ne.s32.totalorder %s163_s1, %s112_s22  ;;  %p116_p0 = scmp.lt.u32.totalorder %s112_s22, %s163_s1 }
  0x42   :  { %p118_p1 = pnand %p116_p0, %p113_p13 }
  0x44   :  { %121 = shalt.err (!%p118_p1)
}
  0x45   :  { %62 = dma.vmem_to_hbm [thread:$0]  %s60_s18, 256, %s163_s1, [#allocation4]  }
  0x46   :  { %124 = dma.done.wait [#allocation4], 256  }
  0x47   :  { %125 = vsyncadd [#allocation4], 4294967040 }
  0x48   :  { %66 = vsyncpa [#allocation3], 1 }
  0x49   :  { %67 = vsyncpa [#allocation4], 1 }

</bundles_post_ra>
